<compile_context>
chip_gen: v7x
topology: tpu7x:2x2x1
jax: 0.10.0
libtpu: 0.0.40
codegen_flags: <defaults>
</compile_context>

<pallas_src>
import jax
import jax.numpy as jnp
from jax import lax
from jax.experimental import pallas as pl
from jax.experimental.pallas import tpu as pltpu

LANE = 128  # lane-dense padding target for hidden / num_classes


def mlp_kernel(x_ref, w1_ref, b1_ref, w2_ref, b2_ref, o_ref):
    # x tile: [TB, input_size] f32 -> bf16 for the MXU (cast is a free VPU op).
    x = x_ref[...].astype(jnp.bfloat16)

    # fc1: contract x dim 1 with w1 dim 1 (w1 kept in PyTorch (out, in) layout,
    # so no transpose is ever materialized).  f32 accumulation on the MXU.
    h = lax.dot_general(
        x, w1_ref[...],
        dimension_numbers=(((1,), (1,)), ((), ())),
        preferred_element_type=jnp.float32,
    )
    # Bias + ReLU in f32 (v5e-safe VPU path), then cast for the second dot.
    h = jnp.maximum(h + b1_ref[...], 0.0).astype(jnp.bfloat16)

    # fc2: same transposed contraction, f32 accumulation.
    out = lax.dot_general(
        h, w2_ref[...],
        dimension_numbers=(((1,), (1,)), ((), ())),
        preferred_element_type=jnp.float32,
    )
    # Lane-dense [TB, 128] store (unmasked vst); real logits live in [:, :C].
    o_ref[...] = (out + b2_ref[...]).astype(o_ref.dtype)


def prepare_params(w1, b1, w2, b2, *, lane_pad=LANE):
    """One-time parameter prep (NOT in the per-call path).

    Keeps PyTorch (out, in) layout, zero-pads hidden and num_classes up to a
    lane-dense width, and casts weights to bf16 for the MXU.  Zero padding is
    exact: padded hidden units get 0 pre-activation -> ReLU -> 0 contribution;
    padded class rows produce 0 logits that are sliced off in the wrapper.
    """
    hidden, input_size = w1.shape
    num_classes = w2.shape[0]
    hp = pl.cdiv(max(lane_pad, hidden), lane_pad) * lane_pad
    cp = pl.cdiv(max(lane_pad, num_classes), lane_pad) * lane_pad

    w1_p = jnp.zeros((hp, input_size), jnp.bfloat16).at[:hidden, :].set(
        w1.astype(jnp.bfloat16))
    b1_p = jnp.zeros((1, hp), jnp.float32).at[0, :hidden].set(
        b1.astype(jnp.float32))
    w2_p = jnp.zeros((cp, hp), jnp.bfloat16).at[:num_classes, :hidden].set(
        w2.astype(jnp.bfloat16))
    b2_p = jnp.zeros((1, cp), jnp.float32).at[0, :num_classes].set(
        b2.astype(jnp.float32))
    return w1_p, b1_p, w2_p, b2_p


def neural_network_forward(x, params, num_classes, *, block_b=512):
    """fc2(relu(fc1(x))) -> logits [B, num_classes] (no softmax, as in module)."""
    w1_p, b1_p, w2_p, b2_p = params
    B, input_size = x.shape
    hp = w1_p.shape[0]   # padded hidden width (128)
    cp = w2_p.shape[0]   # padded class width (128)

    # If the whole batch fits in one block, use it exactly (block == full dim,
    # so no (8,128) divisibility issue); otherwise tile with a sublane-aligned
    # block and let Pallas mask the ragged final block.
    tb = B if B <= block_b else block_b
    grid = (pl.cdiv(B, tb),)

    out_padded = pl.pallas_call(
        mlp_kernel,
        out_shape=jax.ShapeDtypeStruct((B, cp), jnp.float32),
        grid=grid,
        in_specs=[
            pl.BlockSpec((tb, input_size), lambda i: (i, 0)),   # x: batch-tiled
            pl.BlockSpec((hp, input_size), lambda i: (0, 0)),   # w1: resident
            pl.BlockSpec((1, hp), lambda i: (0, 0)),            # b1: resident
            pl.BlockSpec((cp, hp), lambda i: (0, 0)),           # w2: resident
            pl.BlockSpec((1, cp), lambda i: (0, 0)),            # b2: resident
        ],
        out_specs=pl.BlockSpec((tb, cp), lambda i: (i, 0)),
        compiler_params=pltpu.CompilerParams(
            dimension_semantics=("parallel",)),                 # v7x: 2 TCs
    )(x, w1_p, b1_p, w2_p, b2_p)

    # Single cheap slice back to the logical class count.
    return out_padded[:, :num_classes]


if __name__ == "__main__":
    # Small shapes consistent with the module: batch=8, input_size=32,
    # hidden=50 (fixed by the module), num_classes=10.
    B, INPUT_SIZE, HIDDEN, NUM_CLASSES = 8, 32, 50, 10

    key = jax.random.PRNGKey(0)
    kx, kw1, kb1, kw2, kb2 = jax.random.split(key, 5)

    x = jax.random.normal(kx, (B, INPUT_SIZE), dtype=jnp.float32)
    # PyTorch-layout parameters (out_features, in_features).
    w1 = jax.random.normal(kw1, (HIDDEN, INPUT_SIZE), dtype=jnp.float32) * 0.1
    b1 = jax.random.normal(kb1, (HIDDEN,), dtype=jnp.float32) * 0.1
    w2 = jax.random.normal(kw2, (NUM_CLASSES, HIDDEN), dtype=jnp.float32) * 0.1
    b2 = jax.random.normal(kb2, (NUM_CLASSES,), dtype=jnp.float32) * 0.1

    params = prepare_params(w1, b1, w2, b2)   # one-time prep (pad + bf16 cast)

    out = neural_network_forward(x, params, NUM_CLASSES)
    out = jax.block_until_ready(out)
    assert out.shape == (B, NUM_CLASSES)

    # Tight check vs a plain-JAX reference using the SAME bf16 operands /
    # f32 accumulation the kernel uses.
    w1_p, b1_p, w2_p, b2_p = params
    xb = x.astype(jnp.bfloat16)
    h_ref = lax.dot_general(xb, w1_p, (((1,), (1,)), ((), ())),
                            preferred_element_type=jnp.float32)
    h_ref = jnp.maximum(h_ref + b1_p, 0.0).astype(jnp.bfloat16)
    ref_p = lax.dot_general(h_ref, w2_p, (((1,), (1,)), ((), ())),
                            preferred_element_type=jnp.float32) + b2_p
    ref_bf16 = ref_p[:, :NUM_CLASSES]
    assert jnp.allclose(out, ref_bf16, atol=1e-4, rtol=1e-4)

    # Loose sanity check vs the original full-f32 module math (bf16 rounding
    # is the only source of difference).
    ref_f32 = jnp.maximum(x @ w1.T + b1, 0.0) @ w2.T + b2
    assert jnp.allclose(out, ref_f32, atol=1e-1, rtol=5e-2)

    print("KERNEL_OK")
</pallas_src>

<mosaic_0001>
module attributes {stable_mosaic.version = 11 : i64} {
  func.func @mlp_kernel(%arg0: i32, %arg1: memref<8x32xf32, #tpu.memory_space<vmem>>, %arg2: memref<128x32xbf16, #tpu.memory_space<vmem>>, %arg3: memref<1x128xf32, #tpu.memory_space<vmem>>, %arg4: memref<128x128xbf16, #tpu.memory_space<vmem>>, %arg5: memref<1x128xf32, #tpu.memory_space<vmem>>, %arg6: memref<8x128xf32, #tpu.memory_space<vmem>>) attributes {dimension_semantics = [#tpu.dimension_semantics<parallel>], iteration_bounds = array<i64: 1>, scalar_prefetch = 0 : i64, scratch_operands = 0 : i64, tpu.core_type = #tpu.core_type<tc>, window_params = [{transform_indices = @transform_0, window_bounds = array<i64: 8, 32>}, {pipeline_mode = #tpu.pipeline_mode<synchronous>, transform_indices = @transform_1, window_bounds = array<i64: 128, 32>}, {pipeline_mode = #tpu.pipeline_mode<synchronous>, transform_indices = @transform_2, window_bounds = array<i64: 1, 128>}, {pipeline_mode = #tpu.pipeline_mode<synchronous>, transform_indices = @transform_3, window_bounds = array<i64: 128, 128>}, {pipeline_mode = #tpu.pipeline_mode<synchronous>, transform_indices = @transform_4, window_bounds = array<i64: 1, 128>}, {transform_indices = @transform_5, window_bounds = array<i64: 8, 128>}]} {
    %c0 = arith.constant 0 : index
    %c0_0 = arith.constant 0 : index
    %0 = vector.load %arg1[%c0, %c0_0] : memref<8x32xf32, #tpu.memory_space<vmem>>, vector<8x32xf32>
    %1 = arith.truncf %0 : vector<8x32xf32> to vector<8x32xbf16>
    %c0_1 = arith.constant 0 : index
    %c0_2 = arith.constant 0 : index
    %2 = vector.load %arg2[%c0_1, %c0_2] : memref<128x32xbf16, #tpu.memory_space<vmem>>, vector<128x32xbf16>
    %cst = arith.constant dense<0.000000e+00> : vector<8x128xf32>
    %3 = tpu.matmul %1, %2, %cst {dimension_numbers = #tpu.dot_dimension_numbers<[1], [1], [0], [0], [0, 0, 1, 0], [], []>} : vector<8x32xbf16>, vector<128x32xbf16>, vector<8x128xf32> -> vector<8x128xf32>
    %c0_3 = arith.constant 0 : index
    %c0_4 = arith.constant 0 : index
    %4 = vector.load %arg3[%c0_3, %c0_4] : memref<1x128xf32, #tpu.memory_space<vmem>>, vector<1x128xf32>
    %5 = vector.broadcast %4 : vector<1x128xf32> to vector<8x128xf32>
    %6 = arith.addf %3, %5 : vector<8x128xf32>
    %cst_5 = arith.constant 0.000000e+00 : f32
    %7 = vector.broadcast %cst_5 : f32 to vector<8x128xf32>
    %8 = arith.maximumf %6, %7 : vector<8x128xf32>
    %9 = arith.truncf %8 : vector<8x128xf32> to vector<8x128xbf16>
    %c0_6 = arith.constant 0 : index
    %c0_7 = arith.constant 0 : index
    %10 = vector.load %arg4[%c0_6, %c0_7] : memref<128x128xbf16, #tpu.memory_space<vmem>>, vector<128x128xbf16>
    %cst_8 = arith.constant dense<0.000000e+00> : vector<8x128xf32>
    %11 = tpu.matmul %9, %10, %cst_8 {dimension_numbers = #tpu.dot_dimension_numbers<[1], [1], [0], [0], [0, 0, 1, 0], [], []>} : vector<8x128xbf16>, vector<128x128xbf16>, vector<8x128xf32> -> vector<8x128xf32>
    %c0_9 = arith.constant 0 : index
    %c0_10 = arith.constant 0 : index
    %12 = vector.load %arg5[%c0_9, %c0_10] : memref<1x128xf32, #tpu.memory_space<vmem>>, vector<1x128xf32>
    %13 = vector.broadcast %12 : vector<1x128xf32> to vector<8x128xf32>
    %14 = arith.addf %11, %13 : vector<8x128xf32>
    %c0_11 = arith.constant 0 : index
    %c0_12 = arith.constant 0 : index
    %15 = vector.load %arg6[%c0_11, %c0_12] : memref<8x128xf32, #tpu.memory_space<vmem>>, vector<8x128xf32>
    tpu.vector_store %arg6[%c0_11, %c0_12], %14 {strides = array<i32>} : memref<8x128xf32, #tpu.memory_space<vmem>>, vector<8x128xf32>,
    return
  }
  func.func @transform_0(%arg0: i32) -> (i32, i32) {
    %c0_i32 = arith.constant 0 : i32
    %c0_i32_0 = arith.constant 0 : i32
    return %arg0, %c0_i32 : i32, i32
  }
  func.func @transform_1(%arg0: i32) -> (i32, i32) {
    %c0_i32 = arith.constant 0 : i32
    %c0_i32_0 = arith.constant 0 : i32
    %c0_i32_1 = arith.constant 0 : i32
    return %c0_i32, %c0_i32_0 : i32, i32
  }
  func.func @transform_2(%arg0: i32) -> (i32, i32) {
    %c0_i32 = arith.constant 0 : i32
    %c0_i32_0 = arith.constant 0 : i32
    %c0_i32_1 = arith.constant 0 : i32
    return %c0_i32, %c0_i32_0 : i32, i32
  }
  func.func @transform_3(%arg0: i32) -> (i32, i32) {
    %c0_i32 = arith.constant 0 : i32
    %c0_i32_0 = arith.constant 0 : i32
    %c0_i32_1 = arith.constant 0 : i32
    return %c0_i32, %c0_i32_0 : i32, i32
  }
  func.func @transform_4(%arg0: i32) -> (i32, i32) {
    %c0_i32 = arith.constant 0 : i32
    %c0_i32_0 = arith.constant 0 : i32
    %c0_i32_1 = arith.constant 0 : i32
    return %c0_i32, %c0_i32_0 : i32, i32
  }
  func.func @transform_5(%arg0: i32) -> (i32, i32) {
    %c0_i32 = arith.constant 0 : i32
    %c0_i32_0 = arith.constant 0 : i32
    return %arg0, %c0_i32 : i32, i32
  }
}

</mosaic_0001>

<bundles_post_ra>
// kernel: tpu_custom_call.1
= control target key start
LH: loop header
LB: loop body
LE: loop exit
PB: predicated region body
PF: predicated region fallthrough
CT: control target
= control target key end

     0   :  { %v403_v1 = vmov 0.0   ;;  %vm87_vm0 = vcmask 261120   ;;  %vm404_vm1 = vmmov 0   ;;  %s514_s0 = inlined_call_operand.vmem [shape: f32[8,32], index: 0, kind: input, shape index: {}]   ;;  %s515_s1 = inlined_call_operand.vmem [shape: bf16[128,32], index: 1, kind: input, shape index: {}]   ;;  %s516_s2 = inlined_call_operand.vmem [shape: f32[1,128], index: 2, kind: input, shape index: {}]   ;;  %s517_s3 = inlined_call_operand.vmem [shape: bf16[128,128], index: 3, kind: input, shape index: {}]   ;;  %s518_s4 = inlined_call_operand.vmem [shape: f32[1,128], index: 4, kind: input, shape index: {}]   ;;  %s519_s5 = inlined_call_operand.hbm [shape: f32[8,128], index: 5, kind: output, shape index: {}]  }
   0x1   :  { %v363_v0 = vld [vmem:[%s515_s1] sm:$0xff]   ;;  %320 = vmatprep.subr.bf16.mxu0 %v403_v1  ;;  %340 = vmatprep.subr.bf16.mxu1 %v403_v1  ;;  %v364_v3 = vld [vmem:[%s515_s1 + $0x8] sm:$0xff]   ;;  %v365_v6 = vld [vmem:[%s515_s1 + $0x10] sm:$0xff]  }
   0x2   :  { %v92_v2 = vsel %vm87_vm0, %v363_v0, 0  ;;  %v95_v4 = vsel %vm87_vm0, %v364_v3, 0  ;;  %v371_v5 = vld [vmem:[%s517_s3] sm:$0xff]   ;;  %336 = vmatprep.mubr.msk.bf16.mxu0 %vm404_vm1, %v403_v1  ;;  %356 = vmatprep.mubr.msk.bf16.mxu1 %vm404_vm1, %v403_v1  ;;  %v372_v7 = vld [vmem:[%s517_s3 + $0x8] sm:$0xff]   ;;  %v98_v8 = vsel %vm87_vm0, %v365_v6, 0 }
   0x3   :  { %321 = vmatpush3.bf16.xpose.msra.mxu0 %v92_v2  ;;  %341 = vmatpush3.bf16.xpose.msra.mxu1 %v371_v5 }
   0x4   :  { %322 = vmatprep.subr.bf16.mxu0 %v403_v1  ;;  %342 = vmatprep.subr.bf16.mxu1 %v403_v1 }
   0xb   :  { %323 = vmatpush3.bf16.xpose.msra.mxu0 %v95_v4 }
   0xc   :  { %324 = vmatprep.subr.bf16.mxu0 %v403_v1 }
   0xd   :  { %10 = vsyncpa [#allocation3], 0  ;;  %343 = vmatpush3.bf16.xpose.msra.mxu1 %v372_v7  ;;  %v366_v9 = vld [vmem:[%s515_s1 + $0x18] sm:$0xff]   ;;  %v373_v10 = vld [vmem:[%s517_s3 + $0x10] sm:$0xff]   ;;  %s405_s29 = smov [#allocation2]  }
   0xe   :  { %344 = vmatprep.subr.bf16.mxu1 %v403_v1  ;;  %v101_v11 = vsel %vm87_vm0, %v366_v9, 0  ;;  %v367_v12 = vld [vmem:[%s515_s1 + $0x20] sm:$0xff]   ;;  %v374_v13 = vld [vmem:[%s517_s3 + $0x18] sm:$0xff]   ;;  %v368_v15 = vld [vmem:[%s515_s1 + $0x28] sm:$0xff]   ;;  %s275_s30 = sshll.u32 %s405_s29, 4  ;;  %s276_s30 = int_to_ptr.vmem [resolvable:$true] %s275_s30 }
   0xf   :  { %v104_v14 = vsel %vm87_vm0, %v367_v12, 0  ;;  %v375_v16 = vld [vmem:[%s517_s3 + $0x20] sm:$0xff]   ;;  %v107_v17 = vsel %vm87_vm0, %v368_v15, 0  ;;  %v369_v18 = vld [vmem:[%s515_s1 + $0x30] sm:$0xff]   ;;  %v376_v19 = vld [vmem:[%s517_s3 + $0x28] sm:$0xff]   ;;  %p384_p1 = scmp.lt.s32.totalorder %s276_s30, %s276_s30 }
  0x10   :  { %v110_v20 = vsel %vm87_vm0, %v369_v18, 0  ;;  %v370_v21 = vld [vmem:[%s515_s1 + $0x38] sm:$0xff]   ;;  %v377_v22 = vld [vmem:[%s517_s3 + $0x30] sm:$0xff]   ;;  %v22_v24 = vld [vmem:[%s514_s0] sm:$0xff] }
  0x11   :  { %v113_v23 = vsel %vm87_vm0, %v370_v21, 0  ;;  %v23_v25 = vpack.c.bf16 %v22_v24, %v22_v24  ;;  %v378_v26 = vld [vmem:[%s517_s3 + $0x38] sm:$0xff]   ;;  %v283_v27 = vld [vmem:[%s516_s2] ss:$0 sm:$0xff]  ;;  %s379_s2 = scalar_lea.vmem %s276_s30, 128 }
  0x12   :  { %v293_v35 = vld [vmem:[%s518_s4] ss:$0 sm:$0xff]  ;;  %p380_p0 = scmp.ne.s32.totalorder %s276_s30, %s379_s2  ;;  %p385_p2 = scmp.lt.s32.totalorder %s379_s2, %s379_s2 }
  0x13   :  { %325 = vmatpush3.bf16.xpose.msra.mxu0 %v98_v8 }
  0x14   :  { %326 = vmatprep.subr.bf16.mxu0 %v403_v1  ;;  %p386_p3 = por %p385_p2, %p384_p1 }
  0x15   :  { %345 = vmatpush3.bf16.xpose.msra.mxu1 %v373_v10 }
  0x16   :  { %346 = vmatprep.subr.bf16.mxu1 %v403_v1  ;;  %p387_p4 = pnand %p386_p3, %p380_p0 }
  0x1b   :  { %327 = vmatpush3.bf16.xpose.msra.mxu0 %v101_v11 }
  0x1c   :  { %328 = vmatprep.subr.bf16.mxu0 %v403_v1 }
  0x1d   :  { %347 = vmatpush3.bf16.xpose.msra.mxu1 %v374_v13 }
  0x1e   :  { %348 = vmatprep.subr.bf16.mxu1 %v403_v1 }
  0x23   :  { %329 = vmatpush3.bf16.xpose.msra.mxu0 %v104_v14 }
  0x24   :  { %330 = vmatprep.subr.bf16.mxu0 %v403_v1 }
  0x25   :  { %349 = vmatpush3.bf16.xpose.msra.mxu1 %v375_v16 }
  0x26   :  { %350 = vmatprep.subr.bf16.mxu1 %v403_v1 }
  0x2b   :  { %331 = vmatpush3.bf16.xpose.msra.mxu0 %v107_v17 }
  0x2c   :  { %332 = vmatprep.subr.bf16.mxu0 %v403_v1 }
  0x2d   :  { %351 = vmatpush3.bf16.xpose.msra.mxu1 %v376_v19 }
  0x2e   :  { %352 = vmatprep.subr.bf16.mxu1 %v403_v1 }
  0x33   :  { %333 = vmatpush3.bf16.xpose.msra.mxu0 %v110_v20 }
  0x34   :  { %334 = vmatprep.subr.bf16.mxu0 %v403_v1 }
  0x35   :  { %353 = vmatpush3.bf16.xpose.msra.mxu1 %v377_v22 }
  0x36   :  { %354 = vmatprep.subr.bf16.mxu1 %v403_v1 }
  0x3b   :  { %335 = vmatpush3.bf16.xpose.msra.mxu0 %v113_v23 }
  0x3d   :  { %355 = vmatpush3.bf16.xpose.msra.mxu1 %v378_v26 }
  0x42   :  { %337 = vmatmul.mubr.msk.bf16.vlgmr.msra.gmra.mrb[0].mxu0 %vm87_vm0, %v23_v25 }
 0x115   :  { %v149_v28 = vpop.f32.mrb[0].mxu0 }
 0x116   :  { %v150_v29 = vadd.f32 %v283_v27, %v149_v28  ;;  %v338_v30 = vpop.f32.mrb[1].mxu0 }
 0x117   :  { %v152_v31 = vpop.f32.mrb[2].mxu0 }
 0x118   :  { %v155_v32 = vmax.f32 %v150_v29, 0.0  ;;  %v339_v33 = vpop.f32.mrb[3].mxu0 }
 0x11a   :  { %v156_v34 = vpack.c.bf16 %v155_v32, %v155_v32 }
 0x11c   :  { %357 = vmatmul.mubr.bf16.vlgmr.msra.gmra.mrb[0].mxu1 %v156_v34 }
 0x1ef   :  { %v262_v36 = vpop.f32.mrb[0].mxu1 }
 0x1f0   :  { %v263_v37 = vadd.f32 %v293_v35, %v262_v36  ;;  %v358_v38 = vpop.f32.mrb[1].mxu1 }
 0x1f1   :  { %v265_v39 = vpop.f32.mrb[2].mxu1 }
 0x1f2   :  { %268 = vst [vmem:[#allocation2] sm:$0xff] %v263_v37  ;;  %v359_v40 = vpop.f32.mrb[3].mxu1 }
 0x1f3   :  { %390 = shalt.err (!%p387_p4)
}
 0x1f4   :  { %s391_s4 = scalar_lea.hbm %s519_s5, 128 }
 0x1f5   :  { %p392_p5 = scmp.ne.s32.totalorder %s519_s5, %s391_s4  ;;  %p395_p6 = scmp.lt.u32.totalorder %s391_s4, %s519_s5 }
 0x1f7   :  { %p397_p7 = pnand %p395_p6, %p392_p5 }
 0x1f9   :  { %400 = shalt.err (!%p397_p7)
}
 0x1fa   :  { %278 = dma.vmem_to_hbm [thread:$0]  %s276_s30, 128, %s519_s5, [#allocation3]  }
 0x1fb   :  { %401 = dma.done.wait [#allocation3], 128  }
 0x1fc   :  { %402 = vsyncadd [#allocation3], 4294967168 }
 0x1fd   :  { %282 = vsyncpa [#allocation3], 1 }

</bundles_post_ra>
